<compile_context>
chip_gen: v6e
topology: v6e:2x2x1
jax: 0.10.0
libtpu: 0.0.40
codegen_flags: <defaults>
</compile_context>

<pallas_src>
import functools

import jax
import jax.numpy as jnp
from jax import lax
from jax.experimental import pallas as pl
from jax.experimental.pallas import tpu as pltpu


# ----------------------------------------------------------------------------
# helpers
# ----------------------------------------------------------------------------
def _round_up(v, m):
    return ((v + m - 1) // m) * m


def _vmem_budget_bytes():
    """Per-TensorCore VMEM capacity with ~15% headroom for compiler scratch."""
    try:
        cap = int(pltpu.get_tpu_info().vmem_capacity_bytes)
    except Exception:
        cap = 64 * 1024 * 1024            # conservative (v7x-sized) fallback
    return int(cap * 0.85)


def _num_tensorcores():
    """2 TCs/chip on megacore-style parts (a 'parallel' grid axis shards)."""
    try:
        kind = jax.devices()[0].device_kind.lower()
    except Exception:
        return 1
    return 2 if any(t in kind for t in ("v7", "v5p", "v4", "v3")) else 1


def _pick_tm(batch, n_tc, cap=512):
    """Batch tile: one tile per TC when possible, 16-aligned (bf16 sublane
    packing), 128-aligned once large (full MXU rows), capped at 512."""
    per_core = -(-batch // n_tc)
    tm = max(16, _round_up(per_core, 16))
    if tm >= 128:
        tm = _round_up(tm, 128)
    return min(tm, cap)


# ----------------------------------------------------------------------------
# kernels
# ----------------------------------------------------------------------------
def _resident_kernel(x_ref, w1_ref, w2_ref, o_ref, *, hid_chunk):
    """Fused Linear -> ReLU -> Linear, weights fully resident in VMEM.

    x_ref:  (tm, d_in)        f32 (cast to compute dtype in-kernel)
    w1_ref: (d_in, d_hid)     compute dtype, single-buffered resident
    w2_ref: (d_hid, d_out_p)  compute dtype, single-buffered, lane-padded
    o_ref:  (tm, d_out_p)
    """
    x = x_ref[...].astype(w1_ref.dtype)          # in-kernel cast (VPU)
    d_hid = w1_ref.shape[1]

    if hid_chunk >= d_hid:
        # Single-shot: one MXU pass per layer.
        h = jnp.maximum(
            jnp.dot(x, w1_ref[...], preferred_element_type=jnp.float32), 0.0)
        acc = jnp.dot(h.astype(w2_ref.dtype), w2_ref[...],
                      preferred_element_type=jnp.float32)
    else:
        # Chunk hiddenDim so the live f32 intermediate stays small.
        n_chunks = d_hid // hid_chunk

        def body(c, acc):
            start = pl.multiple_of(c * hid_chunk, hid_chunk)
            h = jnp.maximum(
                jnp.dot(x, w1_ref[:, pl.ds(start, hid_chunk)],
                        preferred_element_type=jnp.float32), 0.0)
            return acc + jnp.dot(h.astype(w2_ref.dtype),
                                 w2_ref[pl.ds(start, hid_chunk), :],
                                 preferred_element_type=jnp.float32)

        acc = lax.fori_loop(0, n_chunks, body,
                            jnp.zeros((x.shape[0], w2_ref.shape[1]),
                                      jnp.float32),
                            unroll=True)

    o_ref[...] = acc.astype(o_ref.dtype)


def _stream_kernel(x_ref, w1_ref, w2_ref, o_ref, acc_ref, xb_ref):
    """Hidden dim as a grid reduction axis; weight chunks are pipelined.

    grid = (B/tm, d_hid/tk)
    x_ref:  (tm, d_in)       f32 (block index constant in k -> DMA'd once per i)
    w1_ref: (d_in, tk)       compute dtype chunk (pipelined)
    w2_ref: (tk, d_out_p)    compute dtype chunk (pipelined)
    acc_ref: (tm, d_out_p)   f32 scratch accumulator
    xb_ref:  (tm, d_in)      compute-dtype scratch copy of x (cast once per i)
    """
    k = pl.program_id(1)

    @pl.when(k == 0)
    def _():
        acc_ref[...] = jnp.zeros_like(acc_ref)
        xb_ref[...] = x_ref[...].astype(xb_ref.dtype)

    h = jnp.maximum(
        jnp.dot(xb_ref[...], w1_ref[...], preferred_element_type=jnp.float32),
        0.0)
    acc_ref[...] += jnp.dot(h.astype(w2_ref.dtype), w2_ref[...],
                            preferred_element_type=jnp.float32)

    @pl.when(k == pl.num_programs(1) - 1)
    def _():
        o_ref[...] = acc_ref[...].astype(o_ref.dtype)


# ----------------------------------------------------------------------------
# wrapper
# ----------------------------------------------------------------------------
@functools.partial(jax.jit, static_argnames=("tm", "hid_chunk", "stream_tk",
                                             "force_stream", "compute_dtype"))
def projection_head(x, w1t, w2t, *, tm=None, hid_chunk=256, stream_tk=256,
                    force_stream=False, compute_dtype=jnp.bfloat16):
    """ProjectionHead forward. x: (B, inputDim) -> (B, outputDim).

    Weights are stored pre-transposed: w1t (inputDim, hiddenDim),
    w2t (hiddenDim, outputDim). Store them in `compute_dtype` (init_params
    does) so the hot path has no per-call weight cast.
    """
    B, d_in = x.shape
    d_hid, d_out = w2t.shape
    assert w1t.shape == (d_in, d_hid)
    out_dtype = x.dtype

    # Only cast weights on mismatch (one-time cost if the caller stored f32).
    if w1t.dtype != compute_dtype:
        w1t = w1t.astype(compute_dtype)
    if w2t.dtype != compute_dtype:
        w2t = w2t.astype(compute_dtype)

    n_tc = _num_tensorcores()
    budget = _vmem_budget_bytes()

    if tm is None:
        tm = _pick_tm(B, n_tc)
    tm = max(16, _round_up(int(tm), 16))

    # Ragged batch: zero-pad rows to a multiple of tm (sliced off at the end).
    B_pad = _round_up(B, tm)
    if B_pad != B:
        x = jnp.pad(x, ((0, B_pad - B), (0, 0)))

    # Lane-dense output: pad output features to a multiple of 128.
    d_out_pad = _round_up(d_out, 128)
    if d_out_pad != d_out:
        w2t = jnp.pad(w2t, ((0, 0), (0, d_out_pad - d_out)))

    cbytes = jnp.dtype(compute_dtype).itemsize
    xbytes = jnp.dtype(x.dtype).itemsize
    obytes = jnp.dtype(out_dtype).itemsize

    # In-kernel hidden chunking (resident path) only when it tiles cleanly.
    if 128 <= hid_chunk < d_hid and d_hid % hid_chunk == 0 and hid_chunk % 128 == 0:
        hid_chunk_eff = int(hid_chunk)
    else:
        hid_chunk_eff = int(d_hid)

    # Resident-weights footprint (weights single-buffered via pl.Buffered(1)).
    need_resident = (
        (d_in * d_hid + d_hid * d_out_pad) * cbytes          # weights x1
        + 2 * tm * d_in * xbytes                              # x tiles (f32, 2x)
        + 2 * tm * d_out_pad * obytes                         # out tiles (2x)
        + tm * d_in * cbytes                                  # in-kernel bf16 x
        + tm * (min(hid_chunk_eff, d_hid) + d_out_pad) * 4    # live f32 h / acc
    )

    use_stream = bool(force_stream) or (need_resident > budget and d_hid >= 128)

    if use_stream:
        # ------------------------------------------------------------------
        # Streaming path: grid=(B/tm, d_hid/tk); weight chunks are pipelined
        # (default double-buffering), f32 accumulator lives in scratch.
        # ------------------------------------------------------------------
        tk = max(128, _round_up(int(stream_tk), 128))

        def stream_need(tk_):
            return (2 * (d_in * tk_ + tk_ * d_out_pad) * cbytes   # weight chunks x2
                    + 2 * tm * d_in * xbytes
                    + 2 * tm * d_out_pad * obytes
                    + tm * d_in * cbytes                           # xb scratch
                    + tm * d_out_pad * 4                           # acc scratch
                    + tm * tk_ * 4)                                # live f32 h

        while tk > 128 and stream_need(tk) > budget:
            tk -= 128

        # Zero-padding hiddenDim is exact: relu(0)=0 and zero W2 rows add 0.
        d_hid_pad = _round_up(d_hid, tk)
        if d_hid_pad != d_hid:
            w1t = jnp.pad(w1t, ((0, 0), (0, d_hid_pad - d_hid)))
            w2t = jnp.pad(w2t, ((0, d_hid_pad - d_hid), (0, 0)))

        need = stream_need(tk)
        vmem_limit = int(min(max(need + need // 2, 32 * 1024 * 1024), budget))
        grid = (B_pad // tm, d_hid_pad // tk)

        out = pl.pallas_call(
            _stream_kernel,
            out_shape=jax.ShapeDtypeStruct((B_pad, d_out_pad), out_dtype),
            grid_spec=pltpu.PrefetchScalarGridSpec(
                num_scalar_prefetch=0,
                grid=grid,
                in_specs=[
                    pl.BlockSpec((tm, d_in), lambda i, k: (i, 0)),
                    pl.BlockSpec((d_in, tk), lambda i, k: (0, k)),
                    pl.BlockSpec((tk, d_out_pad), lambda i, k: (k, 0)),
                ],
                out_specs=pl.BlockSpec((tm, d_out_pad), lambda i, k: (i, 0)),
                scratch_shapes=[
                    pltpu.VMEM((tm, d_out_pad), jnp.float32),
                    pltpu.VMEM((tm, d_in), compute_dtype),
                ],
            ),
            compiler_params=pltpu.CompilerParams(
                dimension_semantics=("parallel", "arbitrary"),
                vmem_limit_bytes=vmem_limit),
        )(x, w1t, w2t)
    else:
        # ------------------------------------------------------------------
        # Resident path: weights DMA'd once and single-buffered; 1-D grid
        # over batch tiles ("parallel" -> sharded across TCs on dual-TC parts).
        # ------------------------------------------------------------------
        need = need_resident
        vmem_limit = int(min(max(need + need // 2, 32 * 1024 * 1024), budget))
        grid = (B_pad // tm,)
        kernel = functools.partial(_resident_kernel, hid_chunk=hid_chunk_eff)

        out = pl.pallas_call(
            kernel,
            out_shape=jax.ShapeDtypeStruct((B_pad, d_out_pad), out_dtype),
            grid_spec=pltpu.PrefetchScalarGridSpec(
                num_scalar_prefetch=0,
                grid=grid,
                in_specs=[
                    pl.BlockSpec((tm, d_in), lambda i: (i, 0)),
                    pl.BlockSpec((d_in, d_hid), lambda i: (0, 0),
                                 pipeline_mode=pl.Buffered(1)),
                    pl.BlockSpec((d_hid, d_out_pad), lambda i: (0, 0),
                                 pipeline_mode=pl.Buffered(1)),
                ],
                out_specs=pl.BlockSpec((tm, d_out_pad), lambda i: (i, 0)),
            ),
            compiler_params=pltpu.CompilerParams(
                dimension_semantics=("parallel",),
                vmem_limit_bytes=vmem_limit),
        )(x, w1t, w2t)

    return out[:B, :d_out]


# ----------------------------------------------------------------------------
# params / references
# ----------------------------------------------------------------------------
def init_params(key, input_dim, hidden_dim, output_dim, dtype=jnp.bfloat16):
    """nn.Linear default init U(-1/sqrt(fan_in), 1/sqrt(fan_in)); weights are
    stored pre-transposed AND in compute dtype (one-time cast, outside the hot
    path)."""
    k1, k2 = jax.random.split(key)
    b1 = 1.0 / jnp.sqrt(input_dim)
    b2 = 1.0 / jnp.sqrt(hidden_dim)
    w1t = jax.random.uniform(k1, (input_dim, hidden_dim), jnp.float32, -b1, b1)
    w2t = jax.random.uniform(k2, (hidden_dim, output_dim), jnp.float32, -b2, b2)
    return w1t.astype(dtype), w2t.astype(dtype)


def _reference_f32(x, w1t, w2t):
    return jnp.maximum(x @ w1t.astype(jnp.float32), 0.0) @ w2t.astype(jnp.float32)


def _reference_compute(x, w1t, w2t, compute_dtype=jnp.bfloat16):
    """Same bf16-operand / f32-accumulate recipe as the kernel."""
    xb = x.astype(compute_dtype)
    h = jnp.maximum(jnp.dot(xb, w1t.astype(compute_dtype),
                            preferred_element_type=jnp.float32), 0.0)
    return jnp.dot(h.astype(compute_dtype), w2t.astype(compute_dtype),
                   preferred_element_type=jnp.float32).astype(x.dtype)


if __name__ == "__main__":
    key = jax.random.PRNGKey(0)

    # Case 1: ProjectionHead(inputDim=32, hiddenDim=64, outputDim=16, 'nonlinear')
    B, D_IN, D_HID, D_OUT = 16, 32, 64, 16
    kx, kp = jax.random.split(key)
    x = jax.random.normal(kx, (B, D_IN), jnp.float32)
    w1t, w2t = init_params(kp, D_IN, D_HID, D_OUT)

    out = jax.block_until_ready(projection_head(x, w1t, w2t))
    assert out.shape == (B, D_OUT)
    ref_c = _reference_compute(x, w1t, w2t)
    ref_f = _reference_f32(x, w1t, w2t)
    assert jnp.allclose(out, ref_c, atol=2e-3, rtol=2e-3), "mismatch vs compute-dtype reference"
    assert jnp.allclose(out, ref_f, atol=5e-2, rtol=5e-2), "mismatch vs f32 reference"

    # Case 2: larger hidden dim + ragged batch.
    B2, D_IN2, D_HID2, D_OUT2 = 20, 32, 256, 16
    kx2, kp2 = jax.random.split(kp)
    x2 = jax.random.normal(kx2, (B2, D_IN2), jnp.float32)
    w1t2, w2t2 = init_params(kp2, D_IN2, D_HID2, D_OUT2)
    ref2 = _reference_compute(x2, w1t2, w2t2)

    # 2a: resident path with in-kernel hidden chunking (fori_loop, unrolled).
    out2a = jax.block_until_ready(projection_head(x2, w1t2, w2t2, hid_chunk=128))
    assert out2a.shape == (B2, D_OUT2)
    assert jnp.allclose(out2a, ref2, atol=2e-3, rtol=2e-3), "mismatch (resident chunked)"

    # 2b: streaming path (hidden dim as grid reduction axis, weights pipelined).
    out2b = jax.block_until_ready(
        projection_head(x2, w1t2, w2t2, force_stream=True, stream_tk=128))
    assert out2b.shape == (B2, D_OUT2)
    assert jnp.allclose(out2b, ref2, atol=2e-3, rtol=2e-3), "mismatch (streamed)"

    print("KERNEL_OK")
</pallas_src>

<mosaic_0001>
module attributes {stable_mosaic.version = 11 : i64} {
  func.func @_resident_kernel(%arg0: i32, %arg1: memref<16x32xf32, #tpu.memory_space<vmem>>, %arg2: memref<32x64xbf16, #tpu.memory_space<vmem>>, %arg3: memref<64x128xbf16, #tpu.memory_space<vmem>>, %arg4: memref<16x128xf32, #tpu.memory_space<vmem>>) attributes {dimension_semantics = [#tpu.dimension_semantics<parallel>], iteration_bounds = array<i64: 1>, scalar_prefetch = 0 : i64, scratch_operands = 0 : i64, tpu.core_type = #tpu.core_type<tc>, window_params = [{transform_indices = @transform_0, window_bounds = array<i64: 16, 32>}, {pipeline_mode = #tpu.pipeline_mode<synchronous>, transform_indices = @transform_1, window_bounds = array<i64: 32, 64>}, {pipeline_mode = #tpu.pipeline_mode<synchronous>, transform_indices = @transform_2, window_bounds = array<i64: 64, 128>}, {transform_indices = @transform_3, window_bounds = array<i64: 16, 128>}]} {
    %c0 = arith.constant 0 : index
    %c0_0 = arith.constant 0 : index
    %0 = vector.load %arg1[%c0, %c0_0] : memref<16x32xf32, #tpu.memory_space<vmem>>, vector<16x32xf32>
    %1 = arith.truncf %0 : vector<16x32xf32> to vector<16x32xbf16>
    %c0_1 = arith.constant 0 : index
    %c0_2 = arith.constant 0 : index
    %2 = vector.load %arg2[%c0_1, %c0_2] : memref<32x64xbf16, #tpu.memory_space<vmem>>, vector<32x64xbf16>
    %cst = arith.constant dense<0.000000e+00> : vector<16x64xf32>
    %3 = tpu.matmul %1, %2, %cst {dimension_numbers = #tpu.dot_dimension_numbers<[1], [0], [0], [1], [0, 0, 1, 1], [], []>} : vector<16x32xbf16>, vector<32x64xbf16>, vector<16x64xf32> -> vector<16x64xf32>
    %cst_3 = arith.constant 0.000000e+00 : f32
    %4 = vector.broadcast %cst_3 : f32 to vector<16x64xf32>
    %5 = arith.maximumf %3, %4 : vector<16x64xf32>
    %6 = arith.truncf %5 : vector<16x64xf32> to vector<16x64xbf16>
    %c0_4 = arith.constant 0 : index
    %c0_5 = arith.constant 0 : index
    %7 = vector.load %arg3[%c0_4, %c0_5] : memref<64x128xbf16, #tpu.memory_space<vmem>>, vector<64x128xbf16>
    %cst_6 = arith.constant dense<0.000000e+00> : vector<16x128xf32>
    %8 = tpu.matmul %6, %7, %cst_6 {dimension_numbers = #tpu.dot_dimension_numbers<[1], [0], [0], [1], [0, 0, 1, 1], [], []>} : vector<16x64xbf16>, vector<64x128xbf16>, vector<16x128xf32> -> vector<16x128xf32>
    %c0_7 = arith.constant 0 : index
    %c0_8 = arith.constant 0 : index
    %9 = vector.load %arg4[%c0_7, %c0_8] : memref<16x128xf32, #tpu.memory_space<vmem>>, vector<16x128xf32>
    tpu.vector_store %arg4[%c0_7, %c0_8], %8 {strides = array<i32>} : memref<16x128xf32, #tpu.memory_space<vmem>>, vector<16x128xf32>,
    return
  }
  func.func @transform_0(%arg0: i32) -> (i32, i32) {
    %c0_i32 = arith.constant 0 : i32
    %c0_i32_0 = arith.constant 0 : i32
    return %arg0, %c0_i32 : i32, i32
  }
  func.func @transform_1(%arg0: i32) -> (i32, i32) {
    %c0_i32 = arith.constant 0 : i32
    %c0_i32_0 = arith.constant 0 : i32
    %c0_i32_1 = arith.constant 0 : i32
    return %c0_i32, %c0_i32_0 : i32, i32
  }
  func.func @transform_2(%arg0: i32) -> (i32, i32) {
    %c0_i32 = arith.constant 0 : i32
    %c0_i32_0 = arith.constant 0 : i32
    %c0_i32_1 = arith.constant 0 : i32
    return %c0_i32, %c0_i32_0 : i32, i32
  }
  func.func @transform_3(%arg0: i32) -> (i32, i32) {
    %c0_i32 = arith.constant 0 : i32
    %c0_i32_0 = arith.constant 0 : i32
    return %arg0, %c0_i32 : i32, i32
  }
}

</mosaic_0001>

<bundles_post_ra>
// kernel: projection_head.1
= control target key start
LH: loop header
LB: loop body
LE: loop exit
PB: predicated region body
PF: predicated region fallthrough
CT: control target
= control target key end

     0   :  { %v247_v1 = vmov 0.0   ;;  %vm248_vm0 = vmmov 0   ;;  %vm35_vm1 = vcmask 261120   ;;  %s299_s0 = inlined_call_operand.vmem [shape: f32[16,32], index: 0, kind: input, shape index: {}]   ;;  %s300_s1 = inlined_call_operand.vmem [shape: bf16[32,64], index: 1, kind: input, shape index: {}]   ;;  %s301_s2 = inlined_call_operand.vmem [shape: bf16[64,128], index: 2, kind: input, shape index: {}]   ;;  %s302_s3 = inlined_call_operand.hbm [shape: f32[16,128], index: 3, kind: output, shape index: {}]  }
   0x1   :  { %v219_v0 = vld [vmem:[%s300_s1 + $0x8] sm:$0xff]   ;;  %194 = vmatprep.subr.bf16.mxu0 %v247_v1  ;;  %v220_v2 = vld [vmem:[%s300_s1] sm:$0xff]   ;;  %202 = vmatprep.subr.bf16.mxu1 %v247_v1  ;;  %v221_v5 = vld [vmem:[%s301_s2 + $0x18] sm:$0xff]  }
   0x2   :  { %195 = vmatpush3.bf16.msra.mxu0 %v219_v0  ;;  %198 = vmatprep.mubr.msk.bf16.mxu0 %vm248_vm0, %v247_v1  ;;  %v16_v3 = vld [vmem:[%s299_s0] sm:$0xff]  ;;  %v17_v4 = vld [vmem:[%s299_s0 + $0x8] sm:$0xff]  ;;  %v222_v6 = vld [vmem:[%s301_s2 + $0x10] sm:$0xff]  }
   0x3   :  { %196 = vmatprep.subr.bf16.mxu0 %v247_v1  ;;  %210 = vmatprep.mubr.msk.bf16.mxu1 %vm248_vm0, %v247_v1  ;;  %v18_v7 = vpack.c.bf16 %v17_v4, %v16_v3 }
   0x4   :  { %203 = vmatpush3.bf16.msra.mxu1 %v221_v5 }
   0x5   :  { %204 = vmatprep.subr.bf16.mxu1 %v247_v1 }
   0x6   :  { %197 = vmatpush3.bf16.msra.mxu0 %v220_v2 }
   0x7   :  { %8 = vsyncpa [#allocation3], 0  ;;  %v223_v8 = vld [vmem:[%s301_s2 + $0x8] sm:$0xff]   ;;  %v224_v9 = vld [vmem:[%s301_s2] sm:$0xff]   ;;  %vm115_vm2 = vcmask 523264   ;;  %s249_s26 = smov [#allocation2]  }
   0x8   :  { %205 = vmatpush3.bf16.msra.mxu1 %v222_v6  ;;  %s167_s27 = sshll.u32 %s249_s26, 4  ;;  %s168_s27 = int_to_ptr.vmem [resolvable:$true] %s167_s27 }
   0x9   :  { %199 = vmatmul.mubr.msk.bf16.vlgmr.msra.gmra.mxu0 %vm35_vm1, %v18_v7  ;;  %206 = vmatprep.subr.bf16.mxu1 %v247_v1  ;;  %s225_s2 = scalar_lea.vmem %s168_s27, 256  ;;  %p230_p1 = scmp.lt.s32.totalorder %s168_s27, %s168_s27 }
   0xa   :  { %p226_p0 = scmp.ne.s32.totalorder %s168_s27, %s225_s2  ;;  %p231_p2 = scmp.lt.s32.totalorder %s225_s2, %s225_s2 }
   0xc   :  { %207 = vmatpush3.bf16.msra.mxu1 %v223_v8  ;;  %p232_p3 = por %p231_p2, %p230_p1 }
   0xd   :  { %208 = vmatprep.subr.bf16.mxu1 %v247_v1 }
   0xe   :  { %p233_p4 = pnand %p232_p3, %p226_p0 }
  0x10   :  { %209 = vmatpush3.bf16.msra.mxu1 %v224_v9 }
  0xc9   :  { %v73_v10 = vpop.f32.mrf.mxu0 }
  0xca   :  { %v80_v13 = vmax.f32 %v73_v10, 0.0 }
  0xcb   :  { %v200_v11 = vpop.f32.mrf.mxu0 }
  0xcd   :  { %v76_v12 = vpop.f32.mrf.mxu0 }
  0xce   :  { %v81_v14 = vmax.f32 %v76_v12, 0.0 }
  0xcf   :  { %v201_v15 = vpop.f32.mrf.mxu0 }
  0xd0   :  { %v82_v16 = vpack.c.bf16 %v81_v14, %v80_v13 }
  0xd2   :  { %211 = vmatmul.mubr.msk.bf16.vlgmr.msra.gmra.mxu1 %vm115_vm2, %v82_v16 }
 0x192   :  { %v153_v17 = vpop.f32.mrf.mxu1 }
 0x193   :  { %160 = vst [vmem:[#allocation2] sm:$0xff] %v153_v17 }
 0x194   :  { %v212_v18 = vpop.f32.mrf.mxu1 }
 0x196   :  { %v156_v19 = vpop.f32.mrf.mxu1 }
 0x197   :  { %161 = vst [vmem:[#allocation2 + $0x8] sm:$0xff] %v156_v19 }
 0x198   :  { %v213_v20 = vpop.f32.mrf.mxu1 }
 0x199   :  { %236 = shalt.err (!%p233_p4)
}
 0x19a   :  { %s250_s28 = smov 128   ;;  %s251_s29 = smov 8  }
 0x19b   :  { %173 = dma.vmem_to_hbm [thread:$0]  %s168_s27, 256, %s302_s3, [#allocation3], %s250_s28, %s250_s28, %s251_s29  }
 0x19c   :  { %245 = dma.done.wait [#allocation3], 256  }
 0x19d   :  { %246 = vsyncadd [#allocation3], 4294967040 }
 0x19e   :  { %177 = vsyncpa [#allocation3], 1 }

</bundles_post_ra>
